<compile_context>
chip_gen: v6e
topology: v6e:2x2x1
jax: 0.10.0
libtpu: 0.0.40
codegen_flags: <defaults>
</compile_context>

<pallas_src>
import math

import jax
import jax.numpy as jnp
from jax.experimental import pallas as pl
from jax.experimental.pallas import tpu as pltpu


def _round_up(n: int, m: int) -> int:
    return (n + m - 1) // m * m


def _vmem_capacity_bytes() -> int:
    try:
        info = pltpu.get_tpu_info()
        cap = getattr(info, "vmem_capacity_bytes", None)
        if cap:
            return int(cap)
    except Exception:
        pass
    return 128 * 1024 * 1024  # v5e / v6e default


def _make_fused_kernel(normalize_adj: bool):
    # grid = (batch, node-row tiles). support is computed once per batch element
    # (j == 0) into a resident f32 VMEM scratch and reused by every row tile.
    def kernel(x_ref, w_ref, b_ref, adj_ref, o_ref, supp_ref):
        j = pl.program_id(1)

        @pl.when(j == 0)
        def _():
            supp_ref[...] = jnp.dot(
                x_ref[...], w_ref[...], preferred_element_type=jnp.float32
            )

        adj = adj_ref[...].astype(jnp.float32)                # (TN, N_p)
        out = jnp.dot(adj, supp_ref[...], preferred_element_type=jnp.float32)
        if normalize_adj:
            # Normalize AFTER the matmul: per-row scale of (TN, D_out_p) only.
            rowsum = jnp.sum(adj, axis=-1, keepdims=True)     # (TN, 1)
            inv = jnp.where(rowsum == 0.0, 0.0, 1.0 / rowsum)  # inf -> 0
            out = out * inv
        o_ref[...] = (out + b_ref[...]).astype(o_ref.dtype)

    return kernel


def _make_hoisted_kernel(normalize_adj: bool):
    # support precomputed outside the kernel: no j==0 scratch dependency, so
    # both grid axes may be "parallel" (2-TC sharding on v7x even when B == 1).
    def kernel(s_ref, b_ref, adj_ref, o_ref):
        adj = adj_ref[...].astype(jnp.float32)                # (TN, N_p)
        out = jnp.dot(adj, s_ref[...].astype(jnp.float32),
                      preferred_element_type=jnp.float32)
        if normalize_adj:
            rowsum = jnp.sum(adj, axis=-1, keepdims=True)
            inv = jnp.where(rowsum == 0.0, 0.0, 1.0 / rowsum)
            out = out * inv
        o_ref[...] = (out + b_ref[...]).astype(o_ref.dtype)

    return kernel


def graph_convolution_forward(x, adj, weight, bias=None, *,
                              should_normalize=True,
                              node_tile=None,
                              adj_stream_dtype=None,
                              fuse_support=None,
                              interpret=False):
    """GraphConvolution forward.

    x:      (B, N, D_in) or (N, D_in)
    adj:    (B, N, N) or (N, N)       (broadcast over batch if 2-D)
    weight: (1, D_in, D_out) or (D_in, D_out)
    bias:   (1, D_out), (D_out,) or None
    adj_stream_dtype: optional dtype (e.g. jnp.bfloat16) used only to STREAM the
        adjacency through HBM; exact for 0/1 adjacencies, halves adj bandwidth.
    """
    squeeze_batch = x.ndim == 2
    if squeeze_batch:
        x = x[None]
    B, N, D_in = x.shape

    if weight.ndim == 3:
        # TODO(synk): num_weights > 1 (per-sample weight bank) path not implemented.
        assert weight.shape[0] == 1, "only num_weights == 1 is supported"
        weight = weight[0]
    D_out = weight.shape[1]

    if bias is None:
        bias = jnp.zeros((1, D_out), x.dtype)
    if bias.ndim == 1:
        bias = bias[None]

    adj_batched = adj.ndim == 3
    if not adj_batched:
        adj = adj[None]  # (1, N, N); broadcast across batch via index_map

    # Auto: fuse the support matmul only when the batch axis alone can keep
    # both TensorCores busy; otherwise hoist it and parallelize the node axis.
    if fuse_support is None:
        fuse_support = B >= 2

    # ---- generation-aware VMEM budget (v7x: 64 MiB, v5e/v6e: 128 MiB) ----
    vmem_cap = _vmem_capacity_bytes()
    vmem_limit = min(int(vmem_cap * 0.75), vmem_cap - 8 * 1024 * 1024)
    budget = int(vmem_limit * 0.85)

    # ---- padded geometry: lane-dense (mult. of 128) feature dims ----
    D_in_p = _round_up(D_in, 128)
    D_out_p = _round_up(D_out, 128)
    adj_bytes = jnp.dtype(adj_stream_dtype if adj_stream_dtype is not None
                          else adj.dtype).itemsize
    x_bytes = jnp.dtype(x.dtype).itemsize
    w_bytes = jnp.dtype(weight.dtype).itemsize
    out_bytes = jnp.dtype(x.dtype).itemsize

    if node_tile is None:
        node_tile = 512 if vmem_cap >= 100 * 1024 * 1024 else 256

    def footprint(tn):
        n_p = _round_up(N, tn)
        f = 2 * tn * n_p * adj_bytes          # streamed adj tiles (double-buffered)
        f += 2 * tn * D_out_p * out_bytes     # streamed output tiles
        f += 2 * D_out_p * 4                  # bias
        if fuse_support:
            f += 2 * n_p * D_in_p * x_bytes   # x residency (conservative: 2 bufs)
            f += 2 * D_in_p * D_out_p * w_bytes
            f += n_p * D_out_p * 4            # resident support scratch
        else:
            f += 2 * n_p * D_out_p * 4        # resident support input
        return f

    TN = min(_round_up(node_tile, 8), _round_up(N, 8))
    # shrink while node padding waste exceeds ~12.5% of N
    while TN > 8 and (_round_up(N, TN) - N) * 8 > N:
        TN = max(8, _round_up(TN // 2, 8))
    # shrink until the resident set fits the VMEM budget
    while TN > 8 and footprint(TN) > budget:
        TN = max(8, _round_up(TN // 2, 8))
    # TODO(synk): K-tile the x@W support matmul when even TN=8 exceeds the
    # budget (extremely large graphs where the resident support dominates).
    N_p = _round_up(N, TN)

    # ---- padding (skipped when already aligned) ----
    def pad3(a, n_to, d_to):
        pn, pd = n_to - a.shape[1], d_to - a.shape[2]
        if pn == 0 and pd == 0:
            return a
        return jnp.pad(a, ((0, 0), (0, pn), (0, pd)))

    if D_in_p == D_in and D_out_p == D_out:
        w_p = weight
    else:
        w_p = jnp.pad(weight, ((0, D_in_p - D_in), (0, D_out_p - D_out)))
    b_p = bias if D_out_p == D_out else jnp.pad(bias, ((0, 0), (0, D_out_p - D_out)))

    adj_s = adj if adj_stream_dtype is None else adj.astype(adj_stream_dtype)
    adj_p = pad3(adj_s, N_p, N_p)

    adj_idx = (lambda b, j: (b, j, 0)) if adj_batched else (lambda b, j: (0, j, 0))
    out_shape = jax.ShapeDtypeStruct((B, N_p, D_out_p), x.dtype)
    grid = (B, N_p // TN)

    if fuse_support:
        x_p = pad3(x, N_p, D_in_p)

        def build(single_buffer_constants):
            cm = ({"pipeline_mode": pl.Buffered(1)}
                  if single_buffer_constants else {})
            return pl.pallas_call(
                _make_fused_kernel(should_normalize),
                out_shape=out_shape,
                grid=grid,
                in_specs=[
                    # x[b] resident across the node-tile loop (constant in j)
                    pl.BlockSpec((None, N_p, D_in_p), lambda b, j: (b, 0, 0), **cm),
                    # weight / bias resident across the whole grid
                    pl.BlockSpec((D_in_p, D_out_p), lambda b, j: (0, 0), **cm),
                    pl.BlockSpec((1, D_out_p), lambda b, j: (0, 0), **cm),
                    # adjacency row tile, streamed / pipelined per grid step
                    pl.BlockSpec((None, TN, N_p), adj_idx),
                ],
                out_specs=pl.BlockSpec((None, TN, D_out_p), lambda b, j: (b, j, 0)),
                scratch_shapes=[pltpu.VMEM((N_p, D_out_p), jnp.float32)],
                compiler_params=pltpu.CompilerParams(
                    dimension_semantics=("parallel", "arbitrary"),
                    vmem_limit_bytes=vmem_limit,
                ),
                interpret=interpret,
            )

        try:
            out_p = build(True)(x_p, w_p, b_p, adj_p)
        except Exception:
            # pipeline_mode not supported on this runtime -> default buffering.
            out_p = build(False)(x_p, w_p, b_p, adj_p)
    else:
        # Hoisted support: precision matches the HIGHEST-precision reference.
        supp = jnp.einsum("bni,io->bno", x, weight,
                          precision=jax.lax.Precision.HIGHEST).astype(jnp.float32)
        supp_p = pad3(supp, N_p, D_out_p)

        out_p = pl.pallas_call(
            _make_hoisted_kernel(should_normalize),
            out_shape=out_shape,
            grid=grid,
            in_specs=[
                pl.BlockSpec((None, N_p, D_out_p), lambda b, j: (b, 0, 0)),
                pl.BlockSpec((1, D_out_p), lambda b, j: (0, 0)),
                pl.BlockSpec((None, TN, N_p), adj_idx),
            ],
            out_specs=pl.BlockSpec((None, TN, D_out_p), lambda b, j: (b, j, 0)),
            compiler_params=pltpu.CompilerParams(
                dimension_semantics=("parallel", "parallel"),
                vmem_limit_bytes=vmem_limit,
            ),
            interpret=interpret,
        )(supp_p, b_p, adj_p)

    out = out_p[:, :N, :D_out]
    if squeeze_batch:
        out = out[0]
    return out


def reference_forward(x, adj, weight, bias, should_normalize=True):
    """Pure-JAX reference matching the PyTorch module (num_weights == 1)."""
    if weight.ndim == 3:
        weight = weight[0]
    hp = jax.lax.Precision.HIGHEST
    support = jnp.einsum("...ni,io->...no", x, weight, precision=hp)
    if should_normalize:
        rowsum = adj.sum(-1, keepdims=True)
        inv = jnp.where(rowsum == 0.0, 0.0, 1.0 / rowsum)
        adj = adj * inv
    out = jnp.einsum("...nm,...mo->...no", adj, support, precision=hp)
    if bias is not None:
        out = out + bias
    return out


if __name__ == "__main__":
    # Small shapes consistent with the module: batch of graphs, N nodes,
    # in_features -> out_features.
    B, N, D_in, D_out = 2, 12, 16, 32

    key = jax.random.PRNGKey(0)
    kx, ka, kw, kb = jax.random.split(key, 4)

    x = jax.random.normal(kx, (B, N, D_in), jnp.float32)
    # Random 0/1 adjacency with self-loops (zero rows also handled: inf -> 0).
    adj = (jax.random.uniform(ka, (B, N, N)) > 0.5).astype(jnp.float32)
    adj = jnp.maximum(adj, jnp.eye(N, dtype=jnp.float32)[None])

    stdv = 1.0 / math.sqrt(D_out)
    weight = jax.random.uniform(kw, (1, D_in, D_out), jnp.float32,
                                minval=-stdv, maxval=stdv)
    bias = jax.random.uniform(kb, (1, D_out), jnp.float32,
                              minval=-stdv, maxval=stdv)

    # Fused path (B >= 2): bf16 adjacency stream is exact for 0/1 entries.
    out = graph_convolution_forward(x, adj, weight, bias,
                                    should_normalize=True,
                                    adj_stream_dtype=jnp.bfloat16)
    out = jax.block_until_ready(out)
    ref = reference_forward(x, adj, weight, bias, should_normalize=True)
    assert out.shape == (B, N, D_out), out.shape
    assert jnp.allclose(out, ref, atol=1e-4, rtol=1e-4), \
        float(jnp.abs(out - ref).max())

    # Hoisted path (single graph, 2-D inputs -> both grid axes "parallel").
    out1 = graph_convolution_forward(x[0], adj[0], weight, bias,
                                     should_normalize=True)
    out1 = jax.block_until_ready(out1)
    ref1 = reference_forward(x[0], adj[0], weight, bias, should_normalize=True)
    assert out1.shape == (N, D_out), out1.shape
    assert jnp.allclose(out1, ref1, atol=1e-4, rtol=1e-4), \
        float(jnp.abs(out1 - ref1).max())

    print("KERNEL_OK")
</pallas_src>

<mosaic_0001>
module attributes {stable_mosaic.version = 11 : i64} {
  func.func @kernel(%arg0: i32, %arg1: i32, %arg2: memref<1x16x128xf32, #tpu.memory_space<vmem>>, %arg3: memref<128x128xf32, #tpu.memory_space<vmem>>, %arg4: memref<1x128xf32, #tpu.memory_space<vmem>>, %arg5: memref<1x8x16xbf16, #tpu.memory_space<vmem>>, %arg6: memref<1x8x128xf32, #tpu.memory_space<vmem>>, %arg7: memref<16x128xf32, #tpu.memory_space<vmem>>) attributes {dimension_semantics = [#tpu.dimension_semantics<parallel>, #tpu.dimension_semantics<arbitrary>], iteration_bounds = array<i64: 2, 2>, scalar_prefetch = 0 : i64, scratch_operands = 1 : i64, tpu.core_type = #tpu.core_type<tc>, window_params = [{pipeline_mode = #tpu.pipeline_mode<synchronous>, transform_indices = @transform_0, window_bounds = array<i64: 1, 16, 128>}, {pipeline_mode = #tpu.pipeline_mode<synchronous>, transform_indices = @transform_1, window_bounds = array<i64: 128, 128>}, {pipeline_mode = #tpu.pipeline_mode<synchronous>, transform_indices = @transform_2, window_bounds = array<i64: 1, 128>}, {transform_indices = @transform_3, window_bounds = array<i64: 1, 8, 16>}, {transform_indices = @transform_4, window_bounds = array<i64: 1, 8, 128>}]} {
    %c0_i32 = arith.constant 0 : i32
    %0 = arith.cmpi eq, %arg1, %c0_i32 : i32
    %1 = arith.extui %0 : i1 to i32
    %c0_i32_0 = arith.constant 0 : i32
    %2 = arith.cmpi ne, %1, %c0_i32_0 : i32
    scf.if %2 {
      %c0_14 = arith.constant 0 : index
      %c0_15 = arith.constant 0 : index
      %c0_16 = arith.constant 0 : index
      %24 = vector.load %arg2[%c0_14, %c0_15, %c0_16] : memref<1x16x128xf32, #tpu.memory_space<vmem>>, vector<1x16x128xf32>
      %25 = vector.shape_cast %24 : vector<1x16x128xf32> to vector<16x128xf32>
      %c0_17 = arith.constant 0 : index
      %c0_18 = arith.constant 0 : index
      %26 = vector.load %arg3[%c0_17, %c0_18] : memref<128x128xf32, #tpu.memory_space<vmem>>, vector<128x128xf32>
      %cst_19 = arith.constant dense<0.000000e+00> : vector<16x128xf32>
      %27 = tpu.matmul %25, %26, %cst_19 {dimension_numbers = #tpu.dot_dimension_numbers<[1], [0], [0], [1], [0, 0, 1, 1], [], []>} : vector<16x128xf32>, vector<128x128xf32>, vector<16x128xf32> -> vector<16x128xf32>
      %c0_20 = arith.constant 0 : index
      %c0_21 = arith.constant 0 : index
      %28 = vector.load %arg7[%c0_20, %c0_21] : memref<16x128xf32, #tpu.memory_space<vmem>>, vector<16x128xf32>
      tpu.vector_store %arg7[%c0_20, %c0_21], %27 {strides = array<i32>} : memref<16x128xf32, #tpu.memory_space<vmem>>, vector<16x128xf32>,
    } else {
    }
    %c0 = arith.constant 0 : index
    %c0_1 = arith.constant 0 : index
    %c0_2 = arith.constant 0 : index
    %3 = vector.load %arg5[%c0, %c0_1, %c0_2] : memref<1x8x16xbf16, #tpu.memory_space<vmem>>, vector<1x8x16xbf16>
    %4 = vector.shape_cast %3 : vector<1x8x16xbf16> to vector<8x16xbf16>
    %5 = arith.extf %4 : vector<8x16xbf16> to vector<8x16xf32>
    %c0_3 = arith.constant 0 : index
    %c0_4 = arith.constant 0 : index
    %6 = vector.load %arg7[%c0_3, %c0_4] : memref<16x128xf32, #tpu.memory_space<vmem>>, vector<16x128xf32>
    %cst = arith.constant dense<0.000000e+00> : vector<8x128xf32>
    %7 = tpu.matmul %5, %6, %cst {dimension_numbers = #tpu.dot_dimension_numbers<[1], [0], [0], [1], [0, 0, 1, 1], [], []>} : vector<8x16xf32>, vector<16x128xf32>, vector<8x128xf32> -> vector<8x128xf32>
    %cst_5 = arith.constant dense<0.000000e+00> : vector<8xf32>
    %8 = vector.multi_reduction <add>, %5, %cst_5 [1] : vector<8x16xf32> to vector<8xf32>
    %9 = vector.shape_cast %8 : vector<8xf32> to vector<8x1xf32>
    %cst_6 = arith.constant 0.000000e+00 : f32
    %10 = vector.broadcast %cst_6 : f32 to vector<8x1xf32>
    %11 = arith.cmpf oeq, %9, %10 : vector<8x1xf32>
    %cst_7 = arith.constant 1.000000e+00 : f32
    %12 = vector.broadcast %cst_7 : f32 to vector<8x1xf32>
    %13 = arith.divf %12, %9 : vector<8x1xf32>
    %cst_8 = arith.constant 0.000000e+00 : f32
    %14 = vector.broadcast %cst_8 : f32 to vector<8x1xf32>
    %15 = arith.select %11, %14, %13 : vector<8x1xi1>, vector<8x1xf32>
    %16 = vector.broadcast %15 : vector<8x1xf32> to vector<8x128xf32>
    %17 = arith.mulf %7, %16 : vector<8x128xf32>
    %c0_9 = arith.constant 0 : index
    %c0_10 = arith.constant 0 : index
    %18 = vector.load %arg4[%c0_9, %c0_10] : memref<1x128xf32, #tpu.memory_space<vmem>>, vector<1x128xf32>
    %19 = vector.broadcast %18 : vector<1x128xf32> to vector<8x128xf32>
    %20 = arith.addf %17, %19 : vector<8x128xf32>
    %c0_11 = arith.constant 0 : index
    %c0_12 = arith.constant 0 : index
    %c0_13 = arith.constant 0 : index
    %21 = vector.load %arg6[%c0_11, %c0_12, %c0_13] : memref<1x8x128xf32, #tpu.memory_space<vmem>>, vector<1x8x128xf32>
    %22 = vector.shape_cast %21 : vector<1x8x128xf32> to vector<8x128xf32>
    %23 = vector.shape_cast %20 : vector<8x128xf32> to vector<1x8x128xf32>
    tpu.vector_store %arg6[%c0_11, %c0_12, %c0_13], %23 {strides = array<i32>} : memref<1x8x128xf32, #tpu.memory_space<vmem>>, vector<1x8x128xf32>,
    return
  }
  func.func @transform_0(%arg0: i32, %arg1: i32) -> (i32, i32, i32) {
    %c0_i32 = arith.constant 0 : i32
    %c0_i32_0 = arith.constant 0 : i32
    %c0_i32_1 = arith.constant 0 : i32
    return %arg0, %c0_i32, %c0_i32_0 : i32, i32, i32
  }
  func.func @transform_1(%arg0: i32, %arg1: i32) -> (i32, i32) {
    %c0_i32 = arith.constant 0 : i32
    %c0_i32_0 = arith.constant 0 : i32
    %c0_i32_1 = arith.constant 0 : i32
    return %c0_i32, %c0_i32_0 : i32, i32
  }
  func.func @transform_2(%arg0: i32, %arg1: i32) -> (i32, i32) {
    %c0_i32 = arith.constant 0 : i32
    %c0_i32_0 = arith.constant 0 : i32
    %c0_i32_1 = arith.constant 0 : i32
    return %c0_i32, %c0_i32_0 : i32, i32
  }
  func.func @transform_3(%arg0: i32, %arg1: i32) -> (i32, i32, i32) {
    %c0_i32 = arith.constant 0 : i32
    %c0_i32_0 = arith.constant 0 : i32
    return %arg0, %arg1, %c0_i32 : i32, i32, i32
  }
  func.func @transform_4(%arg0: i32, %arg1: i32) -> (i32, i32, i32) {
    %c0_i32 = arith.constant 0 : i32
    %c0_i32_0 = arith.constant 0 : i32
    return %arg0, %arg1, %c0_i32 : i32, i32, i32
  }
}

module attributes {stable_mosaic.version = 11 : i64} {
  func.func @kernel(%arg0: i32, %arg1: i32, %arg2: memref<1x16x128xf32, #tpu.memory_space<vmem>>, %arg3: memref<128x128xf32, #tpu.memory_space<vmem>>, %arg4: memref<1x128xf32, #tpu.memory_space<vmem>>, %arg5: memref<1x8x16xbf16, #tpu.memory_space<vmem>>, %arg6: memref<1x8x128xf32, #tpu.memory_space<vmem>>, %arg7: memref<16x128xf32, #tpu.memory_space<vmem>>) attributes {dimension_semantics = [#tpu.dimension_semantics<parallel>, #tpu.dimension_semantics<arbitrary>], iteration_bounds = array<i64: 2, 2>, scalar_prefetch = 0 : i64, scratch_operands = 1 : i64, tpu.core_type = #tpu.core_type<tc>, window_params = [{transform_indices = @transform_0, window_bounds = array<i64: 1, 16, 128>}, {pipeline_mode = #tpu.pipeline_mode<synchronous>, transform_indices = @transform_1, window_bounds = array<i64: 128, 128>}, {pipeline_mode = #tpu.pipeline_mode<synchronous>, transform_indices = @transform_2, window_bounds = array<i64: 1, 128>}, {transform_indices = @transform_3, window_bounds = array<i64: 1, 8, 16>}, {transform_indices = @transform_4, window_bounds = array<i64: 1, 8, 128>}]} {
    %c0_i32 = arith.constant 0 : i32
    %0 = arith.cmpi eq, %arg1, %c0_i32 : i32
    %1 = arith.extui %0 : i1 to i32
    %c0_i32_0 = arith.constant 0 : i32
    %2 = arith.cmpi ne, %1, %c0_i32_0 : i32
    scf.if %2 {
      %c0_14 = arith.constant 0 : index
      %c0_15 = arith.constant 0 : index
      %c0_16 = arith.constant 0 : index
      %24 = vector.load %arg2[%c0_14, %c0_15, %c0_16] : memref<1x16x128xf32, #tpu.memory_space<vmem>>, vector<1x16x128xf32>
      %25 = vector.shape_cast %24 : vector<1x16x128xf32> to vector<16x128xf32>
      %c0_17 = arith.constant 0 : index
      %c0_18 = arith.constant 0 : index
      %26 = vector.load %arg3[%c0_17, %c0_18] : memref<128x128xf32, #tpu.memory_space<vmem>>, vector<128x128xf32>
      %cst_19 = arith.constant dense<0.000000e+00> : vector<16x128xf32>
      %27 = tpu.matmul %25, %26, %cst_19 {dimension_numbers = #tpu.dot_dimension_numbers<[1], [0], [0], [1], [0, 0, 1, 1], [], []>} : vector<16x128xf32>, vector<128x128xf32>, vector<16x128xf32> -> vector<16x128xf32>
      %c0_20 = arith.constant 0 : index
      %c0_21 = arith.constant 0 : index
      %28 = vector.load %arg7[%c0_20, %c0_21] : memref<16x128xf32, #tpu.memory_space<vmem>>, vector<16x128xf32>
      tpu.vector_store %arg7[%c0_20, %c0_21], %27 {strides = array<i32>} : memref<16x128xf32, #tpu.memory_space<vmem>>, vector<16x128xf32>,
    } else {
    }
    %c0 = arith.constant 0 : index
    %c0_1 = arith.constant 0 : index
    %c0_2 = arith.constant 0 : index
    %3 = vector.load %arg5[%c0, %c0_1, %c0_2] : memref<1x8x16xbf16, #tpu.memory_space<vmem>>, vector<1x8x16xbf16>
    %4 = vector.shape_cast %3 : vector<1x8x16xbf16> to vector<8x16xbf16>
    %5 = arith.extf %4 : vector<8x16xbf16> to vector<8x16xf32>
    %c0_3 = arith.constant 0 : index
    %c0_4 = arith.constant 0 : index
    %6 = vector.load %arg7[%c0_3, %c0_4] : memref<16x128xf32, #tpu.memory_space<vmem>>, vector<16x128xf32>
    %cst = arith.constant dense<0.000000e+00> : vector<8x128xf32>
    %7 = tpu.matmul %5, %6, %cst {dimension_numbers = #tpu.dot_dimension_numbers<[1], [0], [0], [1], [0, 0, 1, 1], [], []>} : vector<8x16xf32>, vector<16x128xf32>, vector<8x128xf32> -> vector<8x128xf32>
    %cst_5 = arith.constant dense<0.000000e+00> : vector<8xf32>
    %8 = vector.multi_reduction <add>, %5, %cst_5 [1] : vector<8x16xf32> to vector<8xf32>
    %9 = vector.shape_cast %8 : vector<8xf32> to vector<8x1xf32>
    %cst_6 = arith.constant 0.000000e+00 : f32
    %10 = vector.broadcast %cst_6 : f32 to vector<8x1xf32>
    %11 = arith.cmpf oeq, %9, %10 : vector<8x1xf32>
    %cst_7 = arith.constant 1.000000e+00 : f32
    %12 = vector.broadcast %cst_7 : f32 to vector<8x1xf32>
    %13 = arith.divf %12, %9 : vector<8x1xf32>
    %cst_8 = arith.constant 0.000000e+00 : f32
    %14 = vector.broadcast %cst_8 : f32 to vector<8x1xf32>
    %15 = arith.select %11, %14, %13 : vector<8x1xi1>, vector<8x1xf32>
    %16 = vector.broadcast %15 : vector<8x1xf32> to vector<8x128xf32>
    %17 = arith.mulf %7, %16 : vector<8x128xf32>
    %c0_9 = arith.constant 0 : index
    %c0_10 = arith.constant 0 : index
    %18 = vector.load %arg4[%c0_9, %c0_10] : memref<1x128xf32, #tpu.memory_space<vmem>>, vector<1x128xf32>
    %19 = vector.broadcast %18 : vector<1x128xf32> to vector<8x128xf32>
    %20 = arith.addf %17, %19 : vector<8x128xf32>
    %c0_11 = arith.constant 0 : index
    %c0_12 = arith.constant 0 : index
    %c0_13 = arith.constant 0 : index
    %21 = vector.load %arg6[%c0_11, %c0_12, %c0_13] : memref<1x8x128xf32, #tpu.memory_space<vmem>>, vector<1x8x128xf32>
    %22 = vector.shape_cast %21 : vector<1x8x128xf32> to vector<8x128xf32>
    %23 = vector.shape_cast %20 : vector<8x128xf32> to vector<1x8x128xf32>
    tpu.vector_store %arg6[%c0_11, %c0_12, %c0_13], %23 {strides = array<i32>} : memref<1x8x128xf32, #tpu.memory_space<vmem>>, vector<1x8x128xf32>,
    return
  }
  func.func @transform_0(%arg0: i32, %arg1: i32) -> (i32, i32, i32) {
    %c0_i32 = arith.constant 0 : i32
    %c0_i32_0 = arith.constant 0 : i32
    %c0_i32_1 = arith.constant 0 : i32
    return %arg0, %c0_i32, %c0_i32_0 : i32, i32, i32
  }
  func.func @transform_1(%arg0: i32, %arg1: i32) -> (i32, i32) {
    %c0_i32 = arith.constant 0 : i32
    %c0_i32_0 = arith.constant 0 : i32
    %c0_i32_1 = arith.constant 0 : i32
    return %c0_i32, %c0_i32_0 : i32, i32
  }
  func.func @transform_2(%arg0: i32, %arg1: i32) -> (i32, i32) {
    %c0_i32 = arith.constant 0 : i32
    %c0_i32_0 = arith.constant 0 : i32
    %c0_i32_1 = arith.constant 0 : i32
    return %c0_i32, %c0_i32_0 : i32, i32
  }
  func.func @transform_3(%arg0: i32, %arg1: i32) -> (i32, i32, i32) {
    %c0_i32 = arith.constant 0 : i32
    %c0_i32_0 = arith.constant 0 : i32
    return %arg0, %arg1, %c0_i32 : i32, i32, i32
  }
  func.func @transform_4(%arg0: i32, %arg1: i32) -> (i32, i32, i32) {
    %c0_i32 = arith.constant 0 : i32
    %c0_i32_0 = arith.constant 0 : i32
    return %arg0, %arg1, %c0_i32 : i32, i32, i32
  }
}

</mosaic_0001>

<bundles_post_ra>
// kernel: tpu_custom_call.1
= control target key start
LH: loop header
LB: loop body
LE: loop exit
PB: predicated region body
PF: predicated region fallthrough
CT: control target
= control target key end

     0   :  { %s1310_s0 = inlined_call_operand.hbm [shape: f32[2,16,128], index: 0, kind: input, shape index: {}]   ;;  %s1311_s1 = inlined_call_operand.hbm [shape: f32[128,128], index: 1, kind: input, shape index: {}]   ;;  %s1312_s2 = inlined_call_operand.vmem [shape: f32[1,128], index: 2, kind: input, shape index: {}]   ;;  %s1313_s3 = inlined_call_operand.hbm [shape: bf16[2,16,16], index: 3, kind: input, shape index: {}]   ;;  %s1314_s4 = inlined_call_operand.hbm [shape: f32[2,16,128], index: 4, kind: output, shape index: {}]  }
   0x1   :  { %1324 = sst [smem:[#allocation18_spill]] %s1310_s0 }
   0x2   :  { %1325 = sst [smem:[#allocation19_spill]] %s1311_s1 }
   0x3   :  { %1326 = sst [smem:[#allocation20_spill]] %s1312_s2 }
   0x4   :  { %1327 = sst [smem:[#allocation21_spill]] %s1314_s4 }
   0x5   :  { %9 = vsyncpa [#allocation4], 0 }
   0x6   :  { %10 = vsyncpa [#allocation7], 0 }
   0x7   :  { %11 = vsyncpa [#allocation5], 0 }
   0x8   :  { %13 = vsyncpa [#allocation5 + $0x1], 0  ;;  %s1038_s15 = smov 0   ;;  %s1040_s16 = smov 0  }
   0x9   :  { %s1042_s17 = smov 0   ;;  %s1044_s18 = smov 0  }
   0xa   :  { %s1046_s19 = smov 0   ;;  %s1048_s20 = smov 0  }
   0xb   :  { %s1050_s21 = smov 0   ;;  %s1052_s22 = smov 0  }
   0xc   :  { %s1054_s23 = smov 0   ;;  %s1056_s24 = smov 0  }
   0xd   :  { %s1058_s25 = smov 0  }
   0xe LB: > { %1328 = sst [smem:[#allocation14_spill]] %s979_s19  ;;  %s1092_s26 = sadd.s32 4294967295, %s1003_s25   ;;  %s1003_s25 = sphi %s1058_s25, %s19_s25   ;;  %s999_s24 = sphi %s1056_s24, %s1363_s24   ;;  %s995_s23 = sphi %s1054_s23, %s1362_s23   ;;  %s991_s22 = sphi %s1052_s22, %s1361_s22   ;;  %s987_s21 = sphi %s1050_s21, %s1360_s21   ;;  %s983_s20 = sphi %s1048_s20, %s1359_s20   ;;  %s979_s19 = sphi %s1046_s19, %s1358_s19   ;;  %s975_s18 = sphi %s1044_s18, %s1351_s18   ;;  %s971_s17 = sphi %s1042_s17, %s1357_s17   ;;  %s967_s16 = sphi %s1040_s16, %s1356_s16   ;;  %s963_s15 = sphi %s1038_s15, %s1355_s15  }
   0xf   : > { %p51_p0 = scmp.ne.s32.totalorder %s979_s19, %s975_s18  ;;  %p1315_p1 = scmp.eq.s32.totalorder %s1092_s26, 0 }
  0x10   : > { %p584_p2 = scmp.ge.s32.totalorder %s1003_s25, 1  ;;  %p160_p3 = scmp.lt.s32.totalorder %s1003_s25, 5 }
  0x11   : > { %s604_s27 = sshll.u32 %s991_s22, 8  ;;  %p1101_p4 = por %p1315_p1, %p51_p0 }
  0x12   : > { %s1330_s0 = sld [smem:[#allocation18_spill]]  ;;  %p1110_p5 = pnand %p584_p2, %p160_p3 }
  0x13   : > { %s1329_s28 = scalar_select %p1101_p4, 1, 0 }
  0x14   : > { %s1331_s6 = scalar_select %p1110_p5, 1, 0 }
  0x15   : > { %s1005_s7 = smov [#allocation3]   ;;  %p678_p6 = pneg %p1110_p5 }
  0x16   : > { %s175_s8 = sshll.u32 %s1005_s7, 4  ;;  %s1006_s11 = smov [#allocation6]   ;;  %s1116_s8 = int_to_ptr.vmem [resolvable:$true] %s175_s8 }
  0x17   : > { %p1120_p7 = pnand %p678_p6, %p1101_p4  ;;  %p1126_p8 = pnand %p678_p6, %p1315_p1 }
  0x18   : > { %s1108_s5 = scalar_lea.hbm %s1330_s0, %s604_s27  ;;  %s188_s12 = sshll.u32 %s1006_s11, 4  ;;  %s189_s12 = int_to_ptr.vmem [resolvable:$true] %s188_s12 }
  0x19   : > { %s1333_s10 = scalar_select %p1126_p8, 1, 0 }
  0x1a   : > { %s793_s13 = scalar_lea.hbm %s1108_s5, 256  ;;  %p795_p10 = pneg %p1120_p7 }
  0x1b   : > { %p794_p9 = scmp.ne.s32.totalorder %s1108_s5, %s793_s13  ;;  %s798_s27 = scalar_lea.hbm %s1330_s0, 512 }
  0x1c   : > { %p799_p13 = scmp.lt.s32.totalorder %s1108_s5, %s1330_s0  ;;  %p800_p0 = scmp.lt.s32.totalorder %s798_s27, %s793_s13 }
  0x1d   : > { %p796_p11 = pnand %p795_p10, %p794_p9 }
  0x1e   : > { %p801_p2 = por %p800_p0, %p799_p13 }
  0x1f   : > { %p797_p12 = pneg %p796_p11 }
  0x21   : > { %p802_p3 = pnand %p801_p2, %p797_p12 }
  0x23   : > { %805 = shalt.err (!%p802_p3)
}
  0x24   : > { %s806_s7 = scalar_lea.vmem %s1116_s8, 256  ;;  %p814_p11 = scmp.lt.s32.totalorder %s1116_s8, %s1116_s8 }
  0x25   : > { %p807_p6 = scmp.ne.s32.totalorder %s1116_s8, %s806_s7  ;;  %p815_p4 = scmp.lt.s32.totalorder %s806_s7, %s806_s7 }
  0x27   : > { %p809_p1 = pnand %p807_p6, %p795_p10  ;;  %p816_p5 = por %p815_p4, %p814_p11 }
  0x29   : > { %p810_p9 = pneg %p809_p1 }
  0x2b   : > { %p817_p8 = pnand %p816_p5, %p810_p9 }
  0x2d   : > { %820 = shalt.err (!%p817_p8)
}
  0x2e   : > { %s1007_s11 = smov 128   ;;  %s1008_s13 = smov 8  }
  0x2f   : > { %681 = dma.hbm_to_vmem [thread:$0]  (!%p1120_p7), %s1108_s5, 256, %s1116_s8, [#allocation4], %s1007_s11, %s1007_s11, %s1008_s13  }
  0x30   : > { %p1334_p12 = scmp.ne.s32.totalorder %s1333_s10, 0  ;;  %s832_s14 = scalar_lea.vmem %s189_s12, 2048 }
  0x31   : > { %p833_p10 = scmp.ne.s32.totalorder %s189_s12, %s832_s14  ;;  %p840_p2 = scmp.lt.s32.totalorder %s189_s12, %s189_s12 }
  0x32   : > { %p823_p13 = pneg %p1334_p12  ;;  %p841_p3 = scmp.lt.s32.totalorder %s832_s14, %s832_s14 }
  0x34   : > { %p835_p1 = pnand %p833_p10, %p823_p13  ;;  %p842_p4 = por %p841_p3, %p840_p2 }
  0x36   : > { %p836_p0 = pneg %p835_p1 }
  0x38   : > { %p843_p5 = pnand %p842_p4, %p836_p0 }
  0x3a   : > { %846 = shalt.err (!%p843_p5)
}
  0x3b   : > { %s1335_s1 = sld [smem:[#allocation19_spill]]  ;;  %s583_s5 = sadd.s32 4294967294, %s1003_s25  }
  0x3c   : > { %s28_s8 = sadd.s32 1, %s995_s23  ;;  %s31_s9 = sadd.s32 1, %s999_s24 }
  0x3d   : > { %p29_p7 = scmp.ge.s32.totalorder %s28_s8, 2  ;;  %s38_s10 = sadd.s32 1, %s983_s20 }
  0x3e   : > { %s108_s29 = sadd.s32 1, %s971_s17  ;;  %p115_p8 = scmp.ne.s32.totalorder %s971_s17, %s967_s16 }
  0x3f   : > { %s1365_s8 = smov (%p29_p7, %s28_s8), 0  ;;  %s1367_s9 = smov (!%p29_p7, %s31_s9), %s999_s24 }
  0x40   : > { %1336 = sst [smem:[#allocation15_spill]] %s1365_s8  ;;  %s104_s30 = ssub.s32 %s995_s23, %s1365_s8 }
  0x41   : > { %684 = dma.hbm_to_vmem [thread:$0]  (!%p1334_p12), %s1335_s1, 2048, %s189_s12, [#allocation7], %s1007_s11, %s1007_s11, %s1008_s13  }
  0x42   : > { %p33_p6 = scmp.ge.s32.totalorder %s1367_s9, 2  ;;  %p116_p9 = scmp.eq.s32.totalorder %s1003_s25, 0 }
  0x43   : > { %p121_p11 = scmp.ne.s32.totalorder %s967_s16, %s963_s15  ;;  %p147_p12 = scmp.eq.s32.totalorder %s1092_s26, 3 }
  0x44   : > { %s1369_s9 = smov (%p33_p6, %s1367_s9), 0  ;;  %p1174_p13 = por %p116_p9, %p115_p8 }
  0x45   : > { %1337 = sst [smem:[#allocation16_spill]] %s1369_s9  ;;  %p1339_p10 = scmp.eq.s32.totalorder %s1092_s26, 0 }
  0x46   : > { %s35_s11 = ssub.s32 %s999_s24, %s1369_s9  ;;  %p1189_p0 = por %p147_p12, %p115_p8 }
  0x47   : > { %p1183_p1 = por %p121_p11, %p1339_p10  ;;  %p36_p2 = scmp.eq.s32.totalorder %s35_s11, 0 }
  0x48   : > { %s105_s14 = sor.u32 %s104_s30, %s35_s11  ;;  %p153_p4 = scmp.eq.s32.totalorder %s583_s5, 3 }
  0x49   : > { %p106_p3 = scmp.eq.s32.totalorder %s105_s14, 0  ;;  %p694_p7 = scmp.lt.s32.totalorder %s1003_s25, 4 }
  0x4a   : > { %s1194_s18 = scalar_select %p36_p2, %s983_s20, %s38_s10  }
  0x4b   : > { %s1197_s27 = scalar_select %p106_p3, %s971_s17, %s108_s29  }
  0x4c   : > { %1342 = sst [smem:[#allocation17_spill]] %s1194_s18  ;;  %p1202_p5 = por %p153_p4, %p121_p11 }
  0x4d   : > { %s205_s1 = sand.u32 1, %s1003_s25   ;;  %s207_s9 = sand.u32 1, %s971_s17  }
  0x4e   : > { %s589_s8 = sshll.u32 %s207_s9, 2  ;;  %s590_s19 = sshll.u32 %s999_s24, 1 }
  0x4f   : > { %s214_s4 = sadd.s32 %s995_s23, %s590_s19  ;;  %s209_s2 = scalar_lea.vmem [#allocation8], %s589_s8 }
  0x50   : > { %s218_s30 = sshll.u32 %s209_s2, 4  ;;  %s591_s11 = sshll.u32 %s214_s4, 6  ;;  %s219_s30 = int_to_ptr.vmem [resolvable:$true] %s218_s30 }
  0x51   : > { %s216_s29 = scalar_lea.hbm %s1313_s3, %s591_s11  ;;  %p1216_p8 = pnand %p694_p7, %p1174_p13 }
  0x52   : > { %s206_s18 = scalar_lea.sflag [#allocation4], %s205_s1  ;;  %s860_s9 = scalar_lea.vmem %s219_s30, 64 }
  0x53   : > { %p849_p6 = pneg %p1216_p8  ;;  %p861_p9 = scmp.ne.s32.totalorder %s219_s30, %s860_s9 }
  0x54   : > { %s1009_s2 = smov [#allocation8]  }
  0x55   : > { %p863_p11 = pnand %p861_p9, %p849_p6  ;;  %s865_s4 = sshll.u32 %s1009_s2, 4  ;;  %s866_s4 = int_to_ptr.vmem [resolvable:$false] %s865_s4 }
  0x56   : > { %s867_s19 = scalar_lea.vmem %s866_s4, 128  ;;  %p868_p10 = scmp.lt.s32.totalorder %s219_s30, %s866_s4 }
  0x57   : > { %p864_p12 = pneg %p863_p11  ;;  %p869_p2 = scmp.lt.s32.totalorder %s867_s19, %s860_s9 }
  0x59   : > { %p870_p3 = por %p869_p2, %p868_p10 }
  0x5b   : > { %p871_p4 = pnand %p870_p3, %p864_p12 }
  0x5d   : > { %874 = shalt.err (!%p871_p4)
}
  0x5e   : > { %688 = dma.hbm_to_vmem [thread:$0]  (!%p1216_p8), %s216_s29, 64, %s219_s30, %s206_s18  }
  0x5f   : > { %p1345_p13 = scmp.ne.s32.totalorder %s1331_s6, 0 }
  0x60   : > { %p1346_p7 = scmp.ne.s32.totalorder (!%p1345_p13), %s1329_s28, 0 }
  0x61   : > { %227 = sbr.rel (%p1345_p13) target bundleno = 564 (0x234), region = 36 }
  0x66   : > { %946 = dma.done.wait (%p1346_p7), [#allocation4], 256  }
  0x67   : > { %948 = vsyncadd (%p1346_p7), [#allocation4], 4294967040  ;;  %p1347_p6 = scmp.eq.s32.totalorder %s1092_s26, 0 }
  0x69   : > { %950 = dma.done.wait (%p1347_p6), [#allocation7], 2048   ;;  %p1348_p9 = pmov %p1347_p6 }
  0x6a   : > { %s237_s1 = sand.u32 1, %s1092_s26   ;;  %s1236_s8 = sand.u32 1, %s967_s16  }
  0x6b   : > { %952 = vsyncadd (%p1348_p9), [#allocation7], 4294965248  ;;  %s594_s6 = sshll.u32 %s1236_s8, 2  ;;  %s238_s12 = scalar_lea.sflag [#allocation4], %s237_s1 }
  0x6c   : > { %s1239_s18 = scalar_lea.vmem [#allocation8], %s594_s6 }
  0x6d   : > { %954 = dma.done.wait (%p1183_p1), %s238_s12, 64  }
  0x6e   : > { %956 = vsyncadd (%p1183_p1), %s238_s12, 4294967232  ;;  %s595_s28 = sshll.u32 %s1236_s8, 3  ;;  %p596_p8 = scmp.ne.s32.totalorder %s987_s21, 0 }
  0x6f   : > { %s1246_s30 = scalar_lea.vmem [#allocation9], %s595_s28 }
  0x70   : > { %269 = sbr.rel (%p596_p8) target bundleno = 346 (0x15a), region = 52 }
  0x75   : > { %v287_v0 = vld [vmem:[#allocation6 + $0x78] sm:$0xff]  ;;  %v286_v1 = vld [vmem:[#allocation6 + $0x70] sm:$0xff]  ;;  %v285_v2 = vld [vmem:[#allocation6 + $0x68] sm:$0xff] }
  0x76   : > { %626 = vmatprep.subr.mxu0 %v287_v0  ;;  %v284_v3 = vld [vmem:[#allocation6 + $0x60] sm:$0xff]  ;;  %v270_v4 = vld [vmem:[#allocation3] sm:$0xff]  ;;  %v283_v5 = vld [vmem:[#allocation6 + $0x58] sm:$0xff] }
  0x77   : > { %627 = vmatpush3.msra.mxu0 %v287_v0  ;;  %658 = vmatprep.mubr.f32.mxu0 %v270_v4  ;;  %v282_v6 = vld [vmem:[#allocation6 + $0x50] sm:$0xff]  ;;  %v281_v7 = vld [vmem:[#allocation6 + $0x48] sm:$0xff]  ;;  %v280_v8 = vld [vmem:[#allocation6 + $0x40] sm:$0xff] }
  0x78   : > { %628 = vmatprep.subr.mxu0 %v286_v1  ;;  %v279_v9 = vld [vmem:[#allocation6 + $0x38] sm:$0xff]  ;;  %v278_v10 = vld [vmem:[#allocation6 + $0x30] sm:$0xff]  ;;  %v277_v11 = vld [vmem:[#allocation6 + $0x28] sm:$0xff] }
  0x79   : > { %629 = vmatpush3.msra.mxu0 %v286_v1  ;;  %v276_v12 = vld [vmem:[#allocation6 + $0x20] sm:$0xff]  ;;  %v275_v13 = vld [vmem:[#allocation6 + $0x18] sm:$0xff]  ;;  %v274_v14 = vld [vmem:[#allocation6 + $0x10] sm:$0xff] }
  0x7a   : > { %630 = vmatprep.subr.mxu0 %v285_v2  ;;  %v273_v15 = vld [vmem:[#allocation6 + $0x8] sm:$0xff]  ;;  %v272_v16 = vld [vmem:[#allocation6] sm:$0xff]  ;;  %v271_v17 = vld [vmem:[#allocation3 + $0x8] sm:$0xff] }
  0x7b   : > { %631 = vmatpush3.msra.mxu0 %v285_v2 }
  0x7c   : > { %632 = vmatprep.subr.mxu0 %v284_v3 }
  0x7d   : > { %633 = vmatpush3.msra.mxu0 %v284_v3 }
  0x7e   : > { %634 = vmatprep.subr.mxu0 %v283_v5 }
  0x7f   : > { %635 = vmatpush3.msra.mxu0 %v283_v5 }
  0x80   : > { %636 = vmatprep.subr.mxu0 %v282_v6 }
  0x81   : > { %637 = vmatpush3.msra.mxu0 %v282_v6 }
  0x82   : > { %638 = vmatprep.subr.mxu0 %v281_v7 }
  0x83   : > { %639 = vmatpush3.msra.mxu0 %v281_v7 }
  0x84   : > { %640 = vmatprep.subr.mxu0 %v280_v8 }
  0x85   : > { %641 = vmatpush3.msra.mxu0 %v280_v8 }
  0x86   : > { %642 = vmatprep.subr.mxu0 %v279_v9 }
  0x87   : > { %643 = vmatpush3.msra.mxu0 %v279_v9 }
  0x88   : > { %644 = vmatprep.subr.mxu0 %v278_v10 }
  0x89   : > { %645 = vmatpush3.msra.mxu0 %v278_v10 }
  0x8a   : > { %646 = vmatprep.subr.mxu0 %v277_v11 }
  0x8b   : > { %647 = vmatpush3.msra.mxu0 %v277_v11 }
  0x8c   : > { %648 = vmatprep.subr.mxu0 %v276_v12 }
  0x8d   : > { %649 = vmatpush3.msra.mxu0 %v276_v12 }
  0x8e   : > { %650 = vmatprep.subr.mxu0 %v275_v13 }
  0x8f   : > { %651 = vmatpush3.msra.mxu0 %v275_v13 }
  0x90   : > { %652 = vmatprep.subr.mxu0 %v274_v14 }
  0x91   : > { %653 = vmatpush3.msra.mxu0 %v274_v14 }
  0x92   : > { %654 = vmatprep.subr.mxu0 %v273_v15 }
  0x93   : > { %655 = vmatpush3.msra.mxu0 %v273_v15 }
  0x94   : > { %656 = vmatprep.subr.mxu0 %v272_v16 }
  0x95   : > { %657 = vmatpush3.msra.mxu0 %v272_v16 }
  0x96   : > { %659 = vmatmul.mubr.f32.vlgmr.msra.gmra.mxu0 %v271_v17 }
 0x156   : > { %v660_v18 = vpop.f32.mrf.mxu0 }
 0x157   : > { %364 = vst [vmem:[#allocation2 + $0x8] sm:$0xff] %v660_v18 }
 0x158   : > { %v354_v19 = vpop.f32.mrf.mxu0 }
 0x159   : > { %363 = vst [vmem:[#allocation2] sm:$0xff] %v354_v19 }
 0x15a PF: > { %v365_v21 = vld [vmem:[%s1239_s18] sm:$0xf]  ;;  %v1010_v22 = vmov 0.0   ;;  %vm1011_vm0 = vmmov 0   ;;  %vm369_vm1 = vcmask 130048   ;;  %s600_s26 = sshll.u32 %s991_s22, 1 }
 0x15b   : > { %661 = vmatprep.subr.mxu0 %v1010_v22  ;;  %665 = vmatprep.mubr.msk.f32.mxu0 %vm1011_vm0, %v1010_v22  ;;  %v366_v24 = vunpack.c.l.bf16 %v365_v21  ;;  %s472_s7 = sadd.s32 %s987_s21, %s600_s26  ;;  %s1349_s10 = sld [smem:[#allocation20_spill]] }
 0x15c   : > { %s601_s29 = sshll.u32 %s472_s7, 7  ;;  %s476_s14 = sshll.u32 %s1246_s30, 4  ;;  %s477_s14 = int_to_ptr.vmem [resolvable:$true] %s476_s14 }
 0x15d   : > { %v443_v25 = vsel %vm369_vm1, %v366_v24, 0.0  ;;  %s1350_s4 = sld [smem:[#allocation21_spill]]  ;;  %s461_s22 = scalar_lea.sflag [#allocation5], %s1236_s8 }
 0x15e   : > { %v368_v20 = vld [vmem:[#allocation2 + $0x8] sm:$0xff]  ;;  %444 = vadd.xlane.f32.xlu0 %v443_v25  ;;  %s875_s1 = scalar_lea.vmem %s477_s14, 128  ;;  %s1012_s21 = smov [#allocation9]  }
 0x15f   : > { %662 = vmatpush3.msra.mxu0 %v368_v20  ;;  %p876_p1 = scmp.ne.s32.totalorder %s477_s14, %s875_s1  ;;  %s879_s6 = sshll.u32 %s1012_s21, 4  ;;  %s880_s6 = int_to_ptr.vmem [resolvable:$false] %s879_s6 }
 0x160   : > { %v367_v23 = vld [vmem:[#allocation2] sm:$0xff]  ;;  %663 = vmatprep.subr.mxu0 %v1010_v22  ;;  %s881_s12 = scalar_lea.vmem %s880_s6, 256  ;;  %p882_p10 = scmp.lt.s32.totalorder %s477_s14, %s880_s6 }
 0x161   : > { %664 = vmatpush3.msra.mxu0 %v367_v23  ;;  %v598_v30 = vld [vmem:[%s1349_s10] ss:$0 sm:$0xff]  ;;  %p877_p11 = pnand %p876_p1, %p1189_p0  ;;  %p883_p2 = scmp.lt.s32.totalorder %s881_s12, %s875_s1 }
 0x162   : > { %666 = vmatmul.mubr.msk.f32.vlgmr.msra.gmra.mxu0 %vm369_vm1, %v366_v24 }
 0x163   : > { %s474_s19 = scalar_lea.hbm %s1350_s4, %s601_s29  ;;  %p878_p12 = pneg %p877_p11 }
 0x164   : > { %p884_p3 = por %p883_p2, %p882_p10 }
 0x166   : > { %p885_p4 = pnand %p884_p3, %p878_p12 }
 0x1e7   : > { %v445_v26 = vpop.xlane.xlu0 %444 }
 0x1e8   : > { %791 = vrcp.f32 %v445_v26  ;;  %vm446_vm2 = vcmp.eq.f32.partialorder %v445_v26, 0.0 }
 0x1f5   : > { %v792_v27 = vpop.eup %791 }
 0x1f6   : > { %v449_v29 = vsel %vm446_vm2, 0.0, %v792_v27 }
 0x222   : > { %v439_v28 = vpop.f32.mrf.mxu0 }
 0x223   : > { %v450_v31 = vmul.f32 %v449_v29, %v439_v28 }
 0x224   : > { %v667_v32 = vpop.f32.mrf.mxu0 }
 0x225   : > { %v458_v33 = vadd.f32 %v598_v30, %v450_v31 }
 0x227   : > { %459 = vst [vmem:[%s1246_s30] sm:$0xff] %v458_v33 }
 0x228   : > { %888 = shalt.err (!%p885_p4)
}
 0x229   : > { %s889_s18 = scalar_lea.hbm %s474_s19, 128  ;;  %s893_s30 = scalar_lea.hbm %s1350_s4, 512 }
 0x22a   : > { %p890_p13 = scmp.ne.s32.totalorder %s474_s19, %s889_s18  ;;  %p894_p9 = scmp.lt.s32.totalorder %s474_s19, %s1350_s4 }
 0x22b   : > { %p895_p8 = scmp.lt.s32.totalorder %s893_s30, %s889_s18 }
 0x22c   : > { %p891_p7 = pnand %p890_p13, %p1189_p0 }
 0x22d   : > { %p896_p1 = por %p895_p8, %p894_p9 }
 0x22e   : > { %p892_p6 = pneg %p891_p7 }
 0x230   : > { %p897_p11 = pnand %p896_p1, %p892_p6 }
 0x232   : > { %900 = shalt.err (!%p897_p11)
}
 0x233   : > { %676 = dma.vmem_to_hbm [thread:$0]  (%p1189_p0), %s477_s14, 128, %s474_s19, %s461_s22  }
 0x234 PF: > { %p696_p12 = scmp.ge.s32.totalorder %s1003_s25, 2  ;;  %s488_s11 = sand.u32 1, %s963_s15  }
 0x235   : > { %s489_s5 = scalar_lea.sflag [#allocation5], %s488_s11 }
 0x236   : > { %p690_p10 = pnand %p696_p12, %p1202_p5 }
 0x238   : > { %p691_p2 = pneg %p690_p10 }
 0x23a   : > { %958 = dma.done.wait (%p691_p2), %s489_s5, 128  }
 0x23b   : > { %960 = vsyncadd (%p691_p2), %s489_s5, 4294967168  ;;  %s19_s25 = sadd.s32 1, %s1003_s25   ;;  %s1351_s18 = sld [smem:[#allocation14_spill]] }
 0x23c   : > { %p16_p3 = scmp.ge.s32.totalorder %s19_s25, 6   ;;  %s1352_s13 = sld [smem:[#allocation17_spill]] }
 0x23d   : > { %s1353_s10 = sld [smem:[#allocation15_spill]]  ;;  %s1355_s15 = smov %s967_s16 }
 0x23e   : > { %s1354_s29 = sld [smem:[#allocation16_spill]]  ;;  %s1356_s16 = smov %s971_s17 }
 0x23f   : > { %s1357_s17 = smov %s1197_s27  ;;  %s1358_s19 = smov %s983_s20 }
 0x240   : > { %s1360_s21 = smov %s995_s23  ;;  %s1361_s22 = smov %s999_s24 }
 0x241   :  { %18 = sbr.rel (!%p16_p3) target bundleno = 14 (0xe), region = 93 }
 0x242   : > { %s1359_s20 = smov %s1352_s13 }
 0x243   : > { %s1362_s23 = smov %s1353_s10 }
 0x244   : > { %s1363_s24 = smov %s1354_s29 }
 0x246   :  { %494 = vsyncpa [#allocation4], 1 }
 0x247   :  { %496 = vsyncpa [#allocation4 + $0x1], 1 }
 0x248   :  { %497 = vsyncpa [#allocation7], 1 }
 0x249   :  { %498 = vsyncpa [#allocation5], 1 }
 0x24a   :  { %500 = vsyncpa [#allocation5 + $0x1], 1 }

// kernel: tpu_custom_call.1
= control target key start
LH: loop header
LB: loop body
LE: loop exit
PB: predicated region body
PF: predicated region fallthrough
CT: control target
= control target key end

     0   :  { %s1332_s0 = inlined_call_operand.hbm [shape: f32[2,16,128], index: 0, kind: input, shape index: {}]   ;;  %s1333_s1 = inlined_call_operand.hbm [shape: f32[128,128], index: 1, kind: input, shape index: {}]   ;;  %s1334_s2 = inlined_call_operand.vmem [shape: f32[1,128], index: 2, kind: input, shape index: {}]   ;;  %s1335_s3 = inlined_call_operand.hbm [shape: bf16[2,16,16], index: 3, kind: input, shape index: {}]   ;;  %s1336_s4 = inlined_call_operand.hbm [shape: f32[2,16,128], index: 4, kind: output, shape index: {}]  }
   0x1   :  { %1348 = sst [smem:[#allocation21_spill]] %s1332_s0 }
   0x2   :  { %1349 = sst [smem:[#allocation22_spill]] %s1333_s1 }
   0x3   :  { %1350 = sst [smem:[#allocation23_spill]] %s1334_s2 }
   0x4   :  { %1351 = sst [smem:[#allocation24_spill]] %s1336_s4 }
   0x5   :  { %9 = vsyncpa [#allocation4], 0 }
   0x6   :  { %11 = vsyncpa [#allocation4 + $0x1], 0 }
   0x7   :  { %12 = vsyncpa [#allocation7], 0 }
   0x8   :  { %13 = vsyncpa [#allocation5], 0 }
   0x9   :  { %15 = vsyncpa [#allocation5 + $0x1], 0  ;;  %s1065_s15 = smov 0   ;;  %s1067_s16 = smov 0  }
   0xa   :  { %s1069_s17 = smov 0   ;;  %s1071_s18 = smov 0  }
   0xb   :  { %s1073_s19 = smov 0   ;;  %s1075_s20 = smov 0  }
   0xc   :  { %s1077_s21 = smov 0   ;;  %s1079_s22 = smov 0  }
   0xd   :  { %s1081_s23 = smov 0   ;;  %s1083_s24 = smov 0  }
   0xe   :  { %s1085_s25 = smov 0  }
   0xf LB: > { %1352 = sst [smem:[#allocation14_spill]] %s990_s15  ;;  %p47_p0 = scmp.ne.s32.totalorder %s1010_s20, %s1006_s19  ;;  %s1030_s25 = sphi %s1085_s25, %s21_s25   ;;  %s1026_s24 = sphi %s1083_s24, %s1396_s24   ;;  %s1022_s23 = sphi %s1081_s23, %s1395_s23   ;;  %s1018_s22 = sphi %s1079_s22, %s1394_s22   ;;  %s1014_s21 = sphi %s1077_s21, %s1393_s21   ;;  %s1010_s20 = sphi %s1075_s20, %s1392_s20   ;;  %s1006_s19 = sphi %s1073_s19, %s1391_s19   ;;  %s1002_s18 = sphi %s1071_s18, %s1390_s18   ;;  %s998_s17 = sphi %s1069_s17, %s1389_s17   ;;  %s994_s16 = sphi %s1067_s16, %s1388_s16   ;;  %s990_s15 = sphi %s1065_s15, %s1387_s15  }
  0x10   : > { %1353 = sst [smem:[#allocation15_spill]] %s1014_s21  ;;  %p1338_p1 = scmp.eq.s32.totalorder %s1030_s25, 0 }
  0x11   : > { %1354 = sst [smem:[#allocation16_spill]] %s1018_s22  ;;  %p1337_p3 = scmp.lt.s32.totalorder %s1030_s25, 4 }
  0x12   : > { %p49_p2 = por %p1338_p1, %p47_p0  ;;  %s191_s27 = sand.u32 1, %s1030_s25  }
  0x13   : > { %s193_s28 = sand.u32 1, %s1010_s20   ;;  %s632_s30 = sshll.u32 %s1026_s24, 8 }
  0x14   : > { %s613_s29 = sshll.u32 %s193_s28, 4  ;;  %s1355_s0 = sld [smem:[#allocation21_spill]] }
  0x15   : > { %s195_s8 = scalar_lea.vmem [#allocation3], %s613_s29  ;;  %p1135_p4 = pnand %p1337_p3, %p49_p2 }
  0x16   : > { %s202_s9 = sshll.u32 %s195_s8, 4  ;;  %s1139_s11 = scalar_lea.sflag [#allocation4], %s191_s27  ;;  %s203_s9 = int_to_ptr.vmem [resolvable:$true] %s202_s9 }
  0x17   : > { %p822_p5 = pneg %p1135_p4  ;;  %s833_s12 = scalar_lea.vmem %s203_s9, 256 }
  0x18   : > { %p834_p6 = scmp.ne.s32.totalorder %s203_s9, %s833_s12  ;;  %s1032_s13 = smov [#allocation3]  }
  0x19   : > { %s838_s14 = sshll.u32 %s1032_s13, 4  ;;  %s839_s14 = int_to_ptr.vmem [resolvable:$false] %s838_s14 }
  0x1a   : > { %s201_s7 = scalar_lea.hbm %s1355_s0, %s632_s30  ;;  %p836_p7 = pnand %p834_p6, %p822_p5 }
  0x1b   : > { %s840_s28 = scalar_lea.vmem %s839_s14, 512  ;;  %p841_p9 = scmp.lt.s32.totalorder %s203_s9, %s839_s14 }
  0x1c   : > { %p837_p8 = pneg %p836_p7  ;;  %p842_p10 = scmp.lt.s32.totalorder %s840_s28, %s833_s12 }
  0x1e   : > { %p843_p11 = por %p842_p10, %p841_p9 }
  0x20   : > { %p844_p12 = pnand %p843_p11, %p837_p8 }
  0x22   : > { %847 = shalt.err (!%p844_p12)
}
  0x23   : > { %s1033_s29 = smov 128   ;;  %s1034_s27 = smov 8  }
  0x24   : > { %713 = dma.hbm_to_vmem [thread:$0]  (!%p1135_p4), %s201_s7, 256, %s203_s9, %s1139_s11, %s1033_s29, %s1033_s29, %s1034_s27  }
  0x25   : > { %s1147_s30 = sadd.s32 4294967295, %s1030_s25   ;;  %p53_p13 = scmp.ne.s32.totalorder %s1006_s19, %s1002_s18 }
  0x26   : > { %p1346_p0 = scmp.eq.s32.totalorder %s1147_s30, 0  ;;  %p610_p5 = scmp.ge.s32.totalorder %s1030_s25, 1 }
  0x27   : > { %p162_p7 = scmp.lt.s32.totalorder %s1030_s25, 5  ;;  %s1035_s7 = smov [#allocation6]  }
  0x28   : > { %p1156_p6 = por %p1346_p0, %p53_p13  ;;  %s174_s8 = sshll.u32 %s1035_s7, 4  ;;  %s175_s8 = int_to_ptr.vmem [resolvable:$true] %s174_s8 }
  0x29   : > { %p1161_p8 = pnand %p610_p5, %p162_p7  ;;  %s859_s18 = scalar_lea.vmem %s175_s8, 2048 }
  0x2a   : > { %p860_p11 = scmp.ne.s32.totalorder %s175_s8, %s859_s18  ;;  %p867_p3 = scmp.lt.s32.totalorder %s175_s8, %s175_s8 }
  0x2b   : > { %p706_p4 = pneg %p1161_p8  ;;  %p868_p2 = scmp.lt.s32.totalorder %s859_s18, %s859_s18 }
  0x2d   : > { %p707_p9 = pnand %p706_p4, %p1346_p0  ;;  %p869_p1 = por %p868_p2, %p867_p3 }
  0x2f   : > { %p850_p10 = pneg %p707_p9 }
  0x31   : > { %p862_p12 = pnand %p860_p11, %p850_p10 }
  0x33   : > { %p863_p13 = pneg %p862_p12 }
  0x35   : > { %p870_p5 = pnand %p869_p1, %p863_p13 }
  0x37   : > { %873 = shalt.err (!%p870_p5)
}
  0x38   : > { %s1359_s1 = sld [smem:[#allocation22_spill]]  ;;  %s609_s12 = sadd.s32 4294967294, %s1030_s25  }
  0x39   : > { %s30_s13 = sadd.s32 1, %s1022_s23  ;;  %s33_s14 = sadd.s32 1, %s1026_s24 }
  0x3a   : > { %p31_p1 = scmp.ge.s32.totalorder %s30_s13, 2  ;;  %s110_s28 = sadd.s32 1, %s998_s17 }
  0x3b   : > { %p117_p3 = scmp.ne.s32.totalorder %s998_s17, %s994_s16  ;;  %p1361_p2 = scmp.eq.s32.totalorder %s1030_s25, 0 }
  0x3c   : > { %s1398_s13 = smov (%p31_p1, %s30_s13), 0  ;;  %s1400_s14 = smov (!%p31_p1, %s33_s14), %s1026_s24 }
  0x3d   : > { %1360 = sst [smem:[#allocation17_spill]] %s1398_s13  ;;  %s106_s7 = ssub.s32 %s1022_s23, %s1398_s13 }
  0x3e   : > { %709 = dma.hbm_to_vmem [thread:$0]  (!%p707_p9), %s1359_s1, 2048, %s175_s8, [#allocation7], %s1033_s29, %s1033_s29, %s1034_s27  }
  0x3f   : > { %p1185_p7 = por %p117_p3, %p1361_p2  ;;  %p35_p4 = scmp.ge.s32.totalorder %s1400_s14, 2 }
  0x40   : > { %p123_p9 = scmp.ne.s32.totalorder %s994_s16, %s990_s15  ;;  %p1363_p10 = scmp.eq.s32.totalorder %s1147_s30, 3 }
  0x41   : > { %p155_p12 = scmp.eq.s32.totalorder %s609_s12, 3  ;;  %s1402_s14 = smov (%p35_p4, %s1400_s14), 0 }
  0x42   : > { %p1193_p11 = por %p1363_p10, %p117_p3  ;;  %1366 = sst [smem:[#allocation19_spill]] %s1402_s14 }
  0x43   : > { %p1201_p13 = por %p123_p9, %p1346_p0  ;;  %p1205_p5 = por %p155_p12, %p123_p9 }
  0x44   : > { %s1364_s27 = scalar_select %p1193_p11, 1, 0 }
  0x45   : > { %s1368_s18 = scalar_select %p1205_p5, 1, 0 }
  0x46   : > { %1365 = sst [smem:[#allocation18_spill]] %s1364_s27  ;;  %s37_s9 = ssub.s32 %s1026_s24, %s1402_s14 }
  0x47   : > { %1369 = sst [smem:[#allocation20_spill]] %s1368_s18  ;;  %s214_s10 = sand.u32 1, %s998_s17  }
  0x48   : > { %p38_p1 = scmp.eq.s32.totalorder %s37_s9, 0  ;;  %s107_s26 = sor.u32 %s106_s7, %s37_s9 }
  0x49   : > { %p108_p3 = scmp.eq.s32.totalorder %s107_s26, 0  ;;  %s616_s12 = sshll.u32 %s214_s10, 2 }
  0x4a   : > { %s1370_s0 = sadd.s32 1, %s1010_s20  ;;  %s617_s15 = sshll.u32 %s1026_s24, 1 }
  0x4b   : > { %s1215_s1 = scalar_select %p38_p1, %s1010_s20, %s1370_s0  }
  0x4c   : > { %s1218_s13 = scalar_select %p108_p3, %s998_s17, %s110_s28  }
  0x4d   : > { %s221_s4 = sadd.s32 %s1022_s23, %s617_s15  ;;  %s216_s2 = scalar_lea.vmem [#allocation8], %s616_s12 }
  0x4e   : > { %s225_s27 = sshll.u32 %s216_s2, 4  ;;  %s618_s22 = sshll.u32 %s221_s4, 6  ;;  %s226_s27 = int_to_ptr.vmem [resolvable:$true] %s225_s27 }
  0x4f   : > { %s223_s14 = scalar_lea.hbm %s1335_s3, %s618_s22  ;;  %p1371_p2 = scmp.lt.s32.totalorder %s1030_s25, 4 }
  0x50   : > { %s887_s0 = scalar_lea.vmem %s226_s27, 64  ;;  %s1036_s2 = smov [#allocation8]  }
  0x51   : > { %p1229_p4 = pnand %p1371_p2, %p1185_p7  ;;  %p888_p10 = scmp.ne.s32.totalorder %s226_s27, %s887_s0 }
  0x52   : > { %s892_s4 = sshll.u32 %s1036_s2, 4  ;;  %s893_s4 = int_to_ptr.vmem [resolvable:$false] %s892_s4 }
  0x53   : > { %p876_p9 = pneg %p1229_p4  ;;  %s894_s15 = scalar_lea.vmem %s893_s4, 128 }
  0x54   : > { %p895_p3 = scmp.lt.s32.totalorder %s226_s27, %s893_s4  ;;  %p896_p0 = scmp.lt.s32.totalorder %s894_s15, %s887_s0 }
  0x55   : > { %p890_p12 = pnand %p888_p10, %p876_p9 }
  0x56   : > { %p897_p5 = por %p896_p0, %p895_p3 }
  0x57   : > { %p891_p1 = pneg %p890_p12 }
  0x59   : > { %p898_p11 = pnand %p897_p5, %p891_p1 }
  0x5b   : > { %901 = shalt.err (!%p898_p11)
}
  0x5c   : > { %716 = dma.hbm_to_vmem [thread:$0]  (!%p1229_p4), %s223_s14, 64, %s226_s27, %s1139_s11  }
  0x5d   : > { %234 = sbr.rel (%p1161_p8) target bundleno = 566 (0x236), region = 36  ;;  %s236_s21 = sand.u32 (!%p1161_p8), 1, %s1147_s30  }
  0x5e   : > { %s238_s22 = sand.u32 (!%p1161_p8), 1, %s1006_s19   ;;  %s237_s7 = scalar_lea.sflag (!%p1161_p8), [#allocation4], %s236_s21 }
  0x5f   : > { %s1242_s28 = sshll.u32 (!%p1161_p8), %s238_s22, 4 }
  0x60   : > { %s240_s29 = scalar_lea.vmem (!%p1161_p8), [#allocation3], %s1242_s28 }
  0x62   : > { %973 = dma.done.wait (%p1156_p6), %s237_s7, 256  }
  0x63   : > { %975 = vsyncadd (%p1156_p6), %s237_s7, 4294967040  ;;  %p1373_p0 = scmp.eq.s32.totalorder %s1147_s30, 0 }
  0x65   : > { %977 = dma.done.wait (%p1373_p0), [#allocation7], 2048   ;;  %p1374_p8 = pmov %p1373_p0 }
  0x66   : > { %s1254_s11 = sand.u32 1, %s994_s16  }
  0x67   : > { %979 = vsyncadd (%p1374_p8), [#allocation7], 4294965248  ;;  %s622_s6 = sshll.u32 %s1254_s11, 2 }
  0x68   : > { %s1257_s14 = scalar_lea.vmem [#allocation8], %s622_s6 }
  0x69   : > { %981 = dma.done.wait (%p1201_p13), %s237_s7, 64  }
  0x6a   : > { %983 = vsyncadd (%p1201_p13), %s237_s7, 4294967232  ;;  %s623_s5 = sshll.u32 %s1254_s11, 3  ;;  %s1375_s18 = sld [smem:[#allocation15_spill]] }
  0x6b   : > { %s1264_s27 = scalar_lea.vmem [#allocation9], %s623_s5 }
  0x70   : > { %p624_p6 = scmp.ne.s32.totalorder %s1375_s18, 0 }
  0x72   : > { %286 = sbr.rel (%p624_p6) target bundleno = 348 (0x15c), region = 52 }
  0x77   : > { %v304_v0 = vld [vmem:[#allocation6 + $0x78] sm:$0xff]  ;;  %v303_v1 = vld [vmem:[#allocation6 + $0x70] sm:$0xff]  ;;  %v302_v2 = vld [vmem:[#allocation6 + $0x68] sm:$0xff] }
  0x78   : > { %654 = vmatprep.subr.mxu0 %v304_v0  ;;  %v301_v3 = vld [vmem:[#allocation6 + $0x60] sm:$0xff]  ;;  %v300_v5 = vld [vmem:[#allocation6 + $0x58] sm:$0xff]  ;;  %v299_v6 = vld [vmem:[#allocation6 + $0x50] sm:$0xff] }
  0x79   : > { %655 = vmatpush3.msra.mxu0 %v304_v0  ;;  %v287_v4 = vld [vmem:[%s240_s29] sm:$0xff]  ;;  %v298_v7 = vld [vmem:[#allocation6 + $0x48] sm:$0xff]  ;;  %v296_v9 = vld [vmem:[#allocation6 + $0x38] sm:$0xff] }
  0x7a   : > { %656 = vmatprep.subr.mxu0 %v303_v1  ;;  %686 = vmatprep.mubr.f32.mxu0 %v287_v4  ;;  %v297_v8 = vld [vmem:[#allocation6 + $0x40] sm:$0xff]  ;;  %v295_v10 = vld [vmem:[#allocation6 + $0x30] sm:$0xff]  ;;  %v294_v11 = vld [vmem:[#allocation6 + $0x28] sm:$0xff] }
  0x7b   : > { %657 = vmatpush3.msra.mxu0 %v303_v1  ;;  %v293_v12 = vld [vmem:[#allocation6 + $0x20] sm:$0xff]  ;;  %v292_v13 = vld [vmem:[#allocation6 + $0x18] sm:$0xff]  ;;  %v291_v14 = vld [vmem:[#allocation6 + $0x10] sm:$0xff] }
  0x7c   : > { %658 = vmatprep.subr.mxu0 %v302_v2  ;;  %v290_v15 = vld [vmem:[#allocation6 + $0x8] sm:$0xff]  ;;  %v289_v16 = vld [vmem:[#allocation6] sm:$0xff] }
  0x7d   : > { %659 = vmatpush3.msra.mxu0 %v302_v2  ;;  %v288_v17 = vld [vmem:[%s240_s29 + $0x8] sm:$0xff] }
  0x7e   : > { %660 = vmatprep.subr.mxu0 %v301_v3 }
  0x7f   : > { %661 = vmatpush3.msra.mxu0 %v301_v3 }
  0x80   : > { %662 = vmatprep.subr.mxu0 %v300_v5 }
  0x81   : > { %663 = vmatpush3.msra.mxu0 %v300_v5 }
  0x82   : > { %664 = vmatprep.subr.mxu0 %v299_v6 }
  0x83   : > { %665 = vmatpush3.msra.mxu0 %v299_v6 }
  0x84   : > { %666 = vmatprep.subr.mxu0 %v298_v7 }
  0x85   : > { %667 = vmatpush3.msra.mxu0 %v298_v7 }
  0x86   : > { %668 = vmatprep.subr.mxu0 %v297_v8 }
  0x87   : > { %669 = vmatpush3.msra.mxu0 %v297_v8 }
  0x88   : > { %670 = vmatprep.subr.mxu0 %v296_v9 }
  0x89   : > { %671 = vmatpush3.msra.mxu0 %v296_v9 }
  0x8a   : > { %672 = vmatprep.subr.mxu0 %v295_v10 }
  0x8b   : > { %673 = vmatpush3.msra.mxu0 %v295_v10 }
  0x8c   : > { %674 = vmatprep.subr.mxu0 %v294_v11 }
  0x8d   : > { %675 = vmatpush3.msra.mxu0 %v294_v11 }
  0x8e   : > { %676 = vmatprep.subr.mxu0 %v293_v12 }
  0x8f   : > { %677 = vmatpush3.msra.mxu0 %v293_v12 }
  0x90   : > { %678 = vmatprep.subr.mxu0 %v292_v13 }
  0x91   : > { %679 = vmatpush3.msra.mxu0 %v292_v13 }
  0x92   : > { %680 = vmatprep.subr.mxu0 %v291_v14 }
  0x93   : > { %681 = vmatpush3.msra.mxu0 %v291_v14 }
  0x94   : > { %682 = vmatprep.subr.mxu0 %v290_v15 }
  0x95   : > { %683 = vmatpush3.msra.mxu0 %v290_v15 }
  0x96   : > { %684 = vmatprep.subr.mxu0 %v289_v16 }
  0x97   : > { %685 = vmatpush3.msra.mxu0 %v289_v16 }
  0x98   : > { %687 = vmatmul.mubr.f32.vlgmr.msra.gmra.mxu0 %v288_v17 }
 0x158   : > { %v688_v18 = vpop.f32.mrf.mxu0 }
 0x159   : > { %381 = vst [vmem:[#allocation2 + $0x8] sm:$0xff] %v688_v18 }
 0x15a   : > { %v371_v19 = vpop.f32.mrf.mxu0 }
 0x15b   : > { %380 = vst [vmem:[#allocation2] sm:$0xff] %v371_v19 }
 0x15c PF: > { %v382_v21 = vld [vmem:[%s1257_s14] sm:$0xf]  ;;  %s1376_s30 = sld [smem:[#allocation16_spill]]  ;;  %v1037_v22 = vmov 0.0   ;;  %vm1038_vm0 = vmmov 0   ;;  %vm386_vm1 = vcmask 130048  }
 0x15d   : > { %689 = vmatprep.subr.mxu0 %v1037_v22  ;;  %s1377_s8 = sld [smem:[#allocation15_spill]]  ;;  %693 = vmatprep.mubr.msk.f32.mxu0 %vm1038_vm0, %v1037_v22  ;;  %v383_v24 = vunpack.c.l.bf16 %v382_v21  ;;  %s493_s15 = sshll.u32 %s1264_s27, 4  ;;  %s494_s15 = int_to_ptr.vmem [resolvable:$true] %s493_s15 }
 0x15e   : > { %s1378_s10 = sld [smem:[#allocation18_spill]]  ;;  %s478_s29 = scalar_lea.sflag [#allocation5], %s1254_s11 }
 0x15f   : > { %v460_v25 = vsel %vm386_vm1, %v383_v24, 0.0  ;;  %s1379_s2 = sld [smem:[#allocation23_spill]]  ;;  %s902_s6 = scalar_lea.vmem %s494_s15, 128 }
 0x160   : > { %v385_v20 = vld [vmem:[#allocation2 + $0x8] sm:$0xff]  ;;  %461 = vadd.xlane.f32.xlu0 %v460_v25  ;;  %s1380_s28 = sld [smem:[#allocation24_spill]]  ;;  %p903_p7 = scmp.ne.s32.totalorder %s494_s15, %s902_s6 }
 0x161   : > { %690 = vmatpush3.msra.mxu0 %v385_v20  ;;  %s1039_s14 = smov [#allocation9]  }
 0x162   : > { %v384_v23 = vld [vmem:[#allocation2] sm:$0xff]  ;;  %691 = vmatprep.subr.mxu0 %v1037_v22  ;;  %s628_s9 = sshll.u32 %s1376_s30, 1  ;;  %s906_s5 = sshll.u32 %s1039_s14, 4  ;;  %s907_s5 = int_to_ptr.vmem [resolvable:$false] %s906_s5 }
 0x163   : > { %692 = vmatpush3.msra.mxu0 %v384_v23  ;;  %s489_s12 = sadd.s32 %s1377_s8, %s628_s9  ;;  %s908_s18 = scalar_lea.vmem %s907_s5, 256 }
 0x164   : > { %694 = vmatmul.mubr.msk.f32.vlgmr.msra.gmra.mxu0 %vm386_vm1, %v383_v24  ;;  %s629_s4 = sshll.u32 %s489_s12, 7  ;;  %p1381_p11 = scmp.ne.s32.totalorder %s1378_s10, 0 }
 0x165   : > { %v626_v30 = vld [vmem:[%s1379_s2] ss:$0 sm:$0xff]  ;;  %p909_p2 = scmp.lt.s32.totalorder %s494_s15, %s907_s5  ;;  %p910_p4 = scmp.lt.s32.totalorder %s908_s18, %s902_s6 }
 0x166   : > { %s491_s7 = scalar_lea.hbm %s1380_s28, %s629_s4  ;;  %p904_p13 = pnand %p903_p7, %p1381_p11 }
 0x167   : > { %p911_p9 = por %p910_p4, %p909_p2 }
 0x168   : > { %p905_p5 = pneg %p904_p13 }
 0x16a   : > { %p912_p10 = pnand %p911_p9, %p905_p5 }
 0x1e9   : > { %v462_v26 = vpop.xlane.xlu0 %461 }
 0x1ea   : > { %818 = vrcp.f32 %v462_v26  ;;  %vm463_vm2 = vcmp.eq.f32.partialorder %v462_v26, 0.0 }
 0x1f7   : > { %v819_v27 = vpop.eup %818 }
 0x1f8   : > { %v466_v29 = vsel %vm463_vm2, 0.0, %v819_v27 }
 0x224   : > { %v456_v28 = vpop.f32.mrf.mxu0 }
 0x225   : > { %v467_v31 = vmul.f32 %v466_v29, %v456_v28 }
 0x226   : > { %v695_v32 = vpop.f32.mrf.mxu0 }
 0x227   : > { %v475_v33 = vadd.f32 %v626_v30, %v467_v31 }
 0x229   : > { %476 = vst [vmem:[%s1264_s27] sm:$0xff] %v475_v33 }
 0x22a   : > { %915 = shalt.err (!%p912_p10)
}
 0x22b   : > { %s916_s30 = scalar_lea.hbm %s491_s7, 128  ;;  %s920_s8 = scalar_lea.hbm %s1380_s28, 512 }
 0x22c   : > { %p917_p12 = scmp.ne.s32.totalorder %s491_s7, %s916_s30  ;;  %p921_p0 = scmp.lt.s32.totalorder %s491_s7, %s1380_s28 }
 0x22d   : > { %p922_p8 = scmp.lt.s32.totalorder %s920_s8, %s916_s30 }
 0x22e   : > { %p918_p1 = pnand %p917_p12, %p1381_p11 }
 0x22f   : > { %p923_p6 = por %p922_p8, %p921_p0 }
 0x230   : > { %p919_p3 = pneg %p918_p1 }
 0x232   : > { %p924_p7 = pnand %p923_p6, %p919_p3 }
 0x234   : > { %927 = shalt.err (!%p924_p7)
}
 0x235   : > { %704 = dma.vmem_to_hbm [thread:$0]  (%p1381_p11), %s494_s15, 128, %s491_s7, %s478_s29  }
 0x236 PF: > { %s1382_s26 = sld [smem:[#allocation14_spill]]  ;;  %p724_p13 = scmp.ge.s32.totalorder %s1030_s25, 2 }
 0x237   : > { %s1383_s0 = sld [smem:[#allocation20_spill]] }
 0x23c   : > { %s505_s2 = sand.u32 1, %s1382_s26  }
 0x23d   : > { %p1384_p5 = scmp.ne.s32.totalorder %s1383_s0, 0  ;;  %s506_s4 = scalar_lea.sflag [#allocation5], %s505_s2 }
 0x23f   : > { %p718_p2 = pnand %p724_p13, %p1384_p5 }
 0x241   : > { %p719_p4 = pneg %p718_p2 }
 0x243   : > { %985 = dma.done.wait (%p719_p4), %s506_s4, 128  }
 0x244   : > { %987 = vsyncadd (%p719_p4), %s506_s4, 4294967168  ;;  %s21_s25 = sadd.s32 1, %s1030_s25   ;;  %s1385_s10 = sld [smem:[#allocation17_spill]] }
 0x245   : > { %p18_p9 = scmp.ge.s32.totalorder %s21_s25, 6   ;;  %s1386_s7 = sld [smem:[#allocation19_spill]] }
 0x246   : > { %s1387_s15 = smov %s994_s16  ;;  %s1388_s16 = smov %s998_s17 }
 0x247   : > { %s1389_s17 = smov %s1218_s13  ;;  %s1390_s18 = smov %s1006_s19 }
 0x248   : > { %s1391_s19 = smov %s1010_s20  ;;  %s1392_s20 = smov %s1215_s1 }
 0x249   : > { %s1393_s21 = smov %s1022_s23  ;;  %s1394_s22 = smov %s1026_s24 }
 0x24a   : > { %s1395_s23 = smov %s1385_s10  ;;  %20 = sbr.rel (!%p18_p9) target bundleno = 15 (0xf), region = 100 }
 0x24b   : > { %s1396_s24 = smov %s1386_s7 }
 0x24f   :  { %511 = vsyncpa [#allocation4], 1 }
 0x250   :  { %513 = vsyncpa [#allocation4 + $0x1], 1 }
 0x251   :  { %514 = vsyncpa [#allocation7], 1 }
 0x252   :  { %515 = vsyncpa [#allocation5], 1 }
 0x253   :  { %517 = vsyncpa [#allocation5 + $0x1], 1 }

</bundles_post_ra>
